<compile_context>
chip_gen: v7x
topology: tpu7x:2x2x1
jax: 0.10.0
libtpu: 0.0.40
codegen_flags: <defaults>
</compile_context>

<pallas_src>
import math

import jax
import jax.numpy as jnp
from jax.experimental import pallas as pl
from jax.experimental.pallas import tpu as pltpu


def _round_up(x, m):
    return ((x + m - 1) // m) * m


def logreg_kernel(x_ref, w_ref, b_ref, o_ref):
    # x_ref: [TB, D] (VMEM batch tile)   w_ref: [1, D] (VMEM, resident across steps)
    # b_ref: [1, 1]  (SMEM scalar)       o_ref: [1, TB] (lane-dense output row)
    #
    # Contraction over D expressed in trans_b form (w @ x^T): both operands keep
    # their native lane-dense layouts, so Mosaic does not need to materialize a
    # transposed copy of the big x tile -- the kernel stays purely DMA-bound.
    logits = jax.lax.dot_general(
        w_ref[...],
        x_ref[...],
        dimension_numbers=(((1,), (1,)), ((), ())),
        preferred_element_type=jnp.float32,
    )
    o_ref[...] = jax.nn.sigmoid(logits + b_ref[0, 0]).astype(o_ref.dtype)


def _vmem_capacity_bytes():
    try:
        return int(pltpu.get_tpu_info().vmem_capacity_bytes)
    except Exception:
        return 64 * 1024 * 1024  # conservative default (v7x has 64 MiB per TC)


_ROW_CAP = 32768  # keep the lane-dense [1, TB] output block a sane size


def _choose_batch_tile(B, D, itemsize, vmem_cap):
    """Biggest 128-aligned batch tile whose double-buffered x tiles fit VMEM.

    - per-x-buffer budget ~ vmem_cap / 4 (two pipeline buffers -> half of VMEM),
      leaving headroom for weight/output buffers and compiler scratch.
      Generation-aware: ~32 MiB/buffer on v5e/v6e (128 MiB VMEM),
      ~16 MiB/buffer on v7x (64 MiB VMEM).
    - lane padding accounted for: a [TB, D] block occupies
      TB * round_up(D, 128) * itemsize bytes in VMEM.
    - if the whole batch would fit in one tile, still split into >=2 grid steps
      (when B >= 256) so v7x's second TensorCore participates.
    """
    per_buffer_budget = vmem_cap // 4
    padded_row_bytes = _round_up(D, 128) * itemsize
    tb = per_buffer_budget // padded_row_bytes
    tb = (tb // 128) * 128
    tb = max(128, min(tb, _ROW_CAP))
    if tb >= B:
        if B >= 256:
            return max(128, (B // 2 // 128) * 128)
        return B
    return tb


def logistic_regression(x, weight, bias):
    """x: [B, D], weight: [1, D] (PyTorch nn.Linear layout), bias: [1].

    Returns sigmoid(x @ weight.T + bias) with shape [B, 1].
    """
    B, D = x.shape
    itemsize = jnp.dtype(x.dtype).itemsize
    w = weight.reshape(1, D).astype(x.dtype)       # lane-dense, no wrapper transpose
    b = bias.reshape(1, 1).astype(jnp.float32)     # scalar in SMEM

    vmem_cap = _vmem_capacity_bytes()
    tb = _choose_batch_tile(B, D, itemsize, vmem_cap)
    grid = (pl.cdiv(B, tb),)

    # VMEM actually needed (double-buffered x + out + weight), with lane/sublane
    # padding; raise the scoped limit accordingly (defaults: 16 MiB v5e,
    # 32 MiB v6e/v7x) so the larger tiles are accepted.
    padded_d = _round_up(D, 128)
    need = (
        2 * tb * padded_d * itemsize                 # x tiles (double-buffered)
        + 2 * 8 * _round_up(tb, 128) * 4             # [1, tb] f32 output tiles
        + 2 * 8 * padded_d * itemsize                # weight tile
        + (2 << 20)                                  # margin for compiler scratch
    )
    vmem_limit = int(min(vmem_cap - (8 << 20), max(need, 32 << 20)))

    # TODO(synk): for very large D (a full [TB, D] row tile won't fit VMEM),
    # add a second "arbitrary" grid axis over D with a [1, TB] f32 accumulator
    # (init/finalize via pl.when) instead of shrinking TB.

    out_row = pl.pallas_call(
        logreg_kernel,
        out_shape=jax.ShapeDtypeStruct((1, B), jnp.float32),
        grid_spec=pltpu.PrefetchScalarGridSpec(
            num_scalar_prefetch=0,
            grid=grid,
            in_specs=[
                pl.BlockSpec((tb, D), lambda i: (i, 0)),    # batch-tiled x (pipelined)
                pl.BlockSpec((1, D), lambda i: (0, 0)),     # weight: VMEM-resident
                pl.BlockSpec(memory_space=pltpu.MemorySpace.SMEM),  # bias scalar
            ],
            out_specs=pl.BlockSpec((1, tb), lambda i: (0, i)),      # lane-dense stores
        ),
        compiler_params=pltpu.CompilerParams(
            dimension_semantics=("parallel",),   # v7x megacore; no-op on v5e/v6e
            vmem_limit_bytes=vmem_limit,
        ),
        cost_estimate=pl.CostEstimate(
            flops=2 * B * D,
            transcendentals=B,
            bytes_accessed=(B * D + D) * itemsize + (B + 1) * 4,
        ),
    )(x, w, b)

    # [1, B] and [B, 1] are byte-identical in row-major; reshape avoids a
    # possible XLA transpose/copy pass over the output.
    return out_row.reshape(B, 1)


def init_params(key, input_dim):
    # nn.init.xavier_uniform_ for weight [1, input_dim]; bias zeros.
    fan_in, fan_out = input_dim, 1
    bound = math.sqrt(6.0 / (fan_in + fan_out))
    weight = jax.random.uniform(
        key, (1, input_dim), dtype=jnp.float32, minval=-bound, maxval=bound
    )
    bias = jnp.zeros((1,), dtype=jnp.float32)
    return weight, bias


if __name__ == "__main__":
    key = jax.random.PRNGKey(0)
    k_w, k_x, k_x2 = jax.random.split(key, 3)

    # Small shape matching the module spec (single grid step).
    batch, input_dim = 8, 32
    weight, bias = init_params(k_w, input_dim)
    x = jax.random.normal(k_x, (batch, input_dim), dtype=jnp.float32)

    out = logistic_regression(x, weight, bias)
    out = jax.block_until_ready(out)
    ref = jax.nn.sigmoid(x @ weight.T + bias)
    assert out.shape == (batch, 1)
    assert jnp.allclose(out, ref, atol=1e-5, rtol=1e-5)

    # Larger batch to exercise the multi-step, pipelined tiling path
    # (and the >=2-grid-step split for v7x megacore).
    big_batch = 4096
    x2 = jax.random.normal(k_x2, (big_batch, input_dim), dtype=jnp.float32)
    out2 = jax.block_until_ready(logistic_regression(x2, weight, bias))
    ref2 = jax.nn.sigmoid(x2 @ weight.T + bias)
    assert out2.shape == (big_batch, 1)
    assert jnp.allclose(out2, ref2, atol=1e-5, rtol=1e-5)

    print("KERNEL_OK")
</pallas_src>

<mosaic_0001>
module attributes {stable_mosaic.version = 11 : i64} {
  func.func @logreg_kernel(%arg0: i32, %arg1: memref<8x32xf32, #tpu.memory_space<vmem>>, %arg2: memref<1x32xf32, #tpu.memory_space<vmem>>, %arg3: memref<1x1xf32, #tpu.memory_space<smem>>, %arg4: memref<1x8xf32, #tpu.memory_space<vmem>>) attributes {dimension_semantics = [#tpu.dimension_semantics<parallel>], iteration_bounds = array<i64: 1>, scalar_prefetch = 0 : i64, scratch_operands = 0 : i64, tpu.core_type = #tpu.core_type<tc>, window_params = [{transform_indices = @transform_0, window_bounds = array<i64: 8, 32>}, {pipeline_mode = #tpu.pipeline_mode<synchronous>, transform_indices = @transform_1, window_bounds = array<i64: 1, 32>}, {transform_indices = @transform_2, window_bounds = array<i64: 1, 1>}, {transform_indices = @transform_3, window_bounds = array<i64: 1, 8>}]} {
    %c0 = arith.constant 0 : index
    %c0_0 = arith.constant 0 : index
    %0 = vector.load %arg2[%c0, %c0_0] : memref<1x32xf32, #tpu.memory_space<vmem>>, vector<1x32xf32>
    %c0_1 = arith.constant 0 : index
    %c0_2 = arith.constant 0 : index
    %1 = vector.load %arg1[%c0_1, %c0_2] : memref<8x32xf32, #tpu.memory_space<vmem>>, vector<8x32xf32>
    %cst = arith.constant dense<0.000000e+00> : vector<1x8xf32>
    %2 = tpu.matmul %0, %1, %cst {dimension_numbers = #tpu.dot_dimension_numbers<[1], [1], [0], [0], [0, 0, 1, 0], [], []>} : vector<1x32xf32>, vector<8x32xf32>, vector<1x8xf32> -> vector<1x8xf32>
    %c0_3 = arith.constant 0 : index
    %c0_4 = arith.constant 0 : index
    %3 = memref.load %arg3[%c0_3, %c0_4] : memref<1x1xf32, #tpu.memory_space<smem>>
    %4 = vector.broadcast %3 : f32 to vector<1x8xf32>
    %5 = arith.addf %2, %4 : vector<1x8xf32>
    %6 = arith.negf %5 : vector<1x8xf32>
    %7 = math.exp %6 : vector<1x8xf32>
    %cst_5 = arith.constant 1.000000e+00 : f32
    %8 = vector.broadcast %cst_5 : f32 to vector<1x8xf32>
    %9 = arith.addf %8, %7 : vector<1x8xf32>
    %10 = arith.divf %8, %9 : vector<1x8xf32>
    %c0_6 = arith.constant 0 : index
    %c0_7 = arith.constant 0 : index
    %11 = vector.load %arg4[%c0_6, %c0_7] : memref<1x8xf32, #tpu.memory_space<vmem>>, vector<1x8xf32>
    tpu.vector_store %arg4[%c0_6, %c0_7], %10 {strides = array<i32>} : memref<1x8xf32, #tpu.memory_space<vmem>>, vector<1x8xf32>,
    return
  }
  func.func @transform_0(%arg0: i32) -> (i32, i32) {
    %c0_i32 = arith.constant 0 : i32
    %c0_i32_0 = arith.constant 0 : i32
    return %arg0, %c0_i32 : i32, i32
  }
  func.func @transform_1(%arg0: i32) -> (i32, i32) {
    %c0_i32 = arith.constant 0 : i32
    %c0_i32_0 = arith.constant 0 : i32
    %c0_i32_1 = arith.constant 0 : i32
    return %c0_i32, %c0_i32_0 : i32, i32
  }
  func.func @transform_2(%arg0: i32) -> (i32, i32) {
    %c0_i32 = arith.constant 0 : i32
    %c0_i32_0 = arith.constant 0 : i32
    %c0_i32_1 = arith.constant 0 : i32
    return %c0_i32, %c0_i32_0 : i32, i32
  }
  func.func @transform_3(%arg0: i32) -> (i32, i32) {
    %c0_i32 = arith.constant 0 : i32
    %c0_i32_0 = arith.constant 0 : i32
    return %c0_i32, %arg0 : i32, i32
  }
}

</mosaic_0001>

<bundles_post_ra>
// kernel: tpu_custom_call.1
= control target key start
LH: loop header
LB: loop body
LE: loop exit
PB: predicated region body
PF: predicated region fallthrough
CT: control target
= control target key end

     0   :  { %9 = vsyncpa [#allocation4], 0  ;;  %s252_s0 = inlined_call_operand.hbm [shape: f32[8,32], index: 0, kind: input, shape index: {}]   ;;  %s253_s1 = inlined_call_operand.vmem [shape: f32[1,32], index: 1, kind: input, shape index: {}]   ;;  %s254_s2 = inlined_call_operand.<no memory space> [shape: f32[1,1], index: 2, kind: input, shape index: {}]   ;;  %s255_s3 = inlined_call_operand.hbm [shape: f32[1,8], index: 3, kind: output, shape index: {}]  }
   0x1   :  { %10 = vsyncpa [#allocation5], 0  ;;  %s198_s12 = smov [#allocation3]   ;;  %s150_s16 = scalar_lea.hbm %s252_s0, 128 }
   0x2   :  { %s17_s13 = sshll.u32 %s198_s12, 4  ;;  %p151_p0 = scmp.ne.s32.totalorder %s252_s0, %s150_s16  ;;  %s18_s13 = int_to_ptr.vmem [resolvable:$true] %s17_s13 }
   0x3   :  { %p154_p1 = scmp.lt.u32.totalorder %s150_s16, %s252_s0 }
   0x5   :  { %p156_p2 = pnand %p154_p1, %p151_p0 }
   0x7   :  { %159 = shalt.err (!%p156_p2)
}
   0x8   :  { %s160_s21 = scalar_lea.vmem %s18_s13, 128  ;;  %p165_p4 = scmp.lt.s32.totalorder %s18_s13, %s18_s13 }
   0x9   :  { %p161_p3 = scmp.ne.s32.totalorder %s18_s13, %s160_s21  ;;  %p166_p5 = scmp.lt.s32.totalorder %s160_s21, %s160_s21 }
   0xb   :  { %p167_p6 = por %p166_p5, %p165_p4 }
   0xd   :  { %p168_p7 = pnand %p167_p6, %p161_p3 }
   0xf   :  { %171 = shalt.err (!%p168_p7)
}
  0x10   :  { %20 = dma.hbm_to_vmem [thread:$0]  %s252_s0, 128, %s18_s13, [#allocation4]  }
  0x11   :  { %194 = dma.done.wait [#allocation4], 128  }
  0x12   :  { %195 = vsyncadd [#allocation4], 4294967168  ;;  %v199_v0 = vmov 0.0   ;;  %vm200_vm0 = vmmov 0   ;;  %vm32_vm1 = vcmask 261120   ;;  %v29_v1 = vld [vmem:[#allocation3] sm:$0xff]  ;;  %v31_v3 = vstv %s254_s2 }
  0x13   :  { %137 = vmatprep.subr.mxu0 %v199_v0  ;;  %139 = vmatprep.mubr.msk.f32.mxu0 %vm200_vm0, %v199_v0  ;;  %v28_v2 = vld [vmem:[%s253_s1] sm:$0x1]  ;;  %s201_s0 = smov [#allocation6]   ;;  %vm115_vm2 = vcmask 57344  }
  0x14   :  { %138 = vmatpush3.xpose.msk.msra.mxu0 %vm32_vm1, %v29_v1  ;;  %s123_s28 = sshll.u32 %s201_s0, 4  ;;  %s124_s28 = int_to_ptr.vmem [resolvable:$true] %s123_s28 }
  0x15   :  { %s172_s1 = scalar_lea.vmem %s124_s28, 16  ;;  %s176_s29 = scalar_lea.vmem %s124_s28, 32 }
  0x16   :  { %p173_p8 = scmp.ne.s32.totalorder %s124_s28, %s172_s1  ;;  %p177_p9 = scmp.lt.s32.totalorder %s124_s28, %s124_s28 }
  0x17   :  { %140 = vmatmul.mubr.msk.f32.vlgmr.msra.gmra.mrb[0].mxu0 %vm32_vm1, %v28_v2  ;;  %p178_p10 = scmp.lt.s32.totalorder %s176_s29, %s172_s1 }
  0x19   :  { %p179_p11 = por %p178_p10, %p177_p9 }
  0x1b   :  { %p180_p12 = pnand %p179_p11, %p173_p8 }
  0xea   :  { %v105_v4 = vpop.f32.mrb[0].mxu0 }
  0xeb   :  { %v106_v5 = vadd.f32 %v105_v4, %v31_v3  ;;  %v141_v6 = vpop.f32.mrb[1].mxu0 }
  0xed   :  { %v134_v7 = vmul.f32 -1.442695, %v106_v5 }
  0xef   :  { %146 = vpow2.f32 %v134_v7 }
  0xf9   :  { %v147_v8 = vpop.eup %146 }
  0xfa   :  { %v112_v9 = vadd.f32 1.0, %v147_v8 }
  0xfc   :  { %148 = vrcp.f32 %v112_v9 }
 0x106   :  { %v149_v10 = vpop.eup %148 }
 0x107   :  { %116 = vst.msk [vmem:[#allocation6] sm:$0x1] %vm115_vm2, %v149_v10 }
 0x108   :  { %183 = shalt.err (!%p180_p12)
}
 0x109   :  { %s184_s4 = scalar_lea.hbm %s255_s3, 16 }
 0x10a   :  { %p185_p13 = scmp.ne.s32.totalorder %s255_s3, %s184_s4  ;;  %p188_p0 = scmp.lt.u32.totalorder %s184_s4, %s255_s3 }
 0x10c   :  { %p190_p1 = pnand %p188_p0, %p185_p13 }
 0x10e   :  { %193 = shalt.err (!%p190_p1)
}
 0x10f   :  { %126 = dma.vmem_to_hbm [thread:$0]  %s124_s28, 16, %s255_s3, [#allocation5]  }
 0x110   :  { %196 = dma.done.wait [#allocation5], 16  }
 0x111   :  { %197 = vsyncadd [#allocation5], 4294967280 }
 0x112   :  { %130 = vsyncpa [#allocation4], 1 }
 0x113   :  { %131 = vsyncpa [#allocation5], 1 }

</bundles_post_ra>
